<compile_context>
chip_gen: v7x
topology: tpu7x:2x2x1
jax: 0.10.0
libtpu: 0.0.40
codegen_flags: <defaults>
</compile_context>

<pallas_src>
import functools

import jax
import jax.numpy as jnp
import numpy as np
from jax import lax
from jax.experimental import pallas as pl
from jax.experimental.pallas import tpu as pltpu


def _round_up(a, b):
    return (a + b - 1) // b * b


def _fused_aspp_kernel(x_ref, w_ref, b_ref, o_ref, slab_ref, *, shifts, cin, fpad):
    # x_ref:    (1, Cin, Lpad)  bf16  flattened zero-padded image (row stride Wp)
    # w_ref:    (Cout, K)       bf16  K = 18*Cin, resident across grid steps
    # b_ref:    (Cout, 1)       f32   summed biases, resident
    # o_ref:    (1, Cout, Fpad) f32   flat output, row stride Wp
    # slab_ref: (K, Fpad)       f32   VMEM scratch column matrix (fused im2col)
    for t, s in enumerate(shifts):            # 18 static taps: (conv, ky, kx)
        slab_ref[t * cin:(t + 1) * cin, :] = (
            x_ref[0, :, pl.ds(s, fpad)].astype(jnp.float32))
    acc = jnp.dot(w_ref[...], slab_ref[...].astype(jnp.bfloat16),
                  preferred_element_type=jnp.float32)          # (Cout, Fpad) f32
    o_ref[0] = (acc + b_ref[...]).astype(o_ref.dtype)


def classifier_module_forward(x_nchw, weights, biases, dilation_series,
                              padding_series, *, matmul_dtype=jnp.bfloat16):
    """out = conv2d_list[0](x) + conv2d_list[1](x)  (exact PyTorch forward)."""
    assert len(weights) >= 2, "forward needs >= 2 convs (else PyTorch returns None)"
    N, Cin, H, W = x_nchw.shape
    Cout = weights[0].shape[0]

    # Only the first two convs contribute to the returned value.
    dils = [int(dilation_series[0]), int(dilation_series[1])]
    pads = [int(padding_series[0]), int(padding_series[1])]
    assert pads[0] - dils[0] == pads[1] - dils[1], \
        "summed conv outputs must match spatially"

    Ho = H + 2 * pads[0] - 2 * dils[0]
    Wo = W + 2 * pads[0] - 2 * dils[0]
    pmax = max(pads)
    Hp, Wp = H + 2 * pmax, W + 2 * pmax

    # Static 1-D tap shifts: with output flat index f = ho*Wp + wo (padded row
    # stride), tap (conv i, ky, kx) reads flat input index f + shift.
    shifts = []
    for d, p in zip(dils, pads):
        o = pmax - p
        for ky in range(3):
            for kx in range(3):
                shifts.append((ky * d + o) * Wp + (kx * d + o))
    smax = max(shifts)

    Fpad = _round_up(Ho * Wp, 128)                     # lane-dense output width
    Lpad = _round_up(max(Hp * Wp, Fpad + smax), 128)   # lane-dense input width
    K = 18 * Cin

    # Wrapper prep: bf16 cast, pmax zero-pad, flatten spatial, tail zero-pad.
    # Only ~1-2x the bf16 x footprint of HBM traffic (v1's taps tensor is gone).
    xb = x_nchw.astype(matmul_dtype)
    xb = jnp.pad(xb, ((0, 0), (0, 0), (pmax, pmax), (pmax, pmax)))
    xb = xb.reshape(N, Cin, Hp * Wp)
    xb = jnp.pad(xb, ((0, 0), (0, 0), (0, Lpad - Hp * Wp)))

    # PyTorch weight (Cout, Cin, 3, 3) -> (Cout, 3, 3, Cin) -> (Cout, 9*Cin),
    # concatenated over the two convs to match the slab row ordering.
    w_all = jnp.concatenate(
        [jnp.transpose(weights[i], (0, 2, 3, 1)).reshape(Cout, 9 * Cin)
         for i in range(2)], axis=1).astype(matmul_dtype)       # (Cout, K)
    b_sum = (biases[0].astype(jnp.float32)
             + biases[1].astype(jnp.float32))[:, None]          # (Cout, 1)

    out_dtype = x_nchw.dtype
    flops = 2 * N * Fpad * K * Cout
    bytes_accessed = (xb.size * np.dtype(matmul_dtype).itemsize
                      + w_all.size * np.dtype(matmul_dtype).itemsize
                      + b_sum.size * 4
                      + N * Cout * Fpad * np.dtype(out_dtype).itemsize)

    kernel = functools.partial(_fused_aspp_kernel, shifts=tuple(shifts),
                               cin=Cin, fpad=Fpad)

    out_flat = pl.pallas_call(
        kernel,
        out_shape=jax.ShapeDtypeStruct((N, Cout, Fpad), out_dtype),
        grid_spec=pltpu.PrefetchScalarGridSpec(
            num_scalar_prefetch=0,
            grid=(N,),
            in_specs=[
                pl.BlockSpec((1, Cin, Lpad), lambda n: (n, 0, 0)),
                pl.BlockSpec((Cout, K), lambda n: (0, 0)),      # resident
                pl.BlockSpec((Cout, 1), lambda n: (0, 0)),      # resident
            ],
            out_specs=pl.BlockSpec((1, Cout, Fpad), lambda n: (n, 0, 0)),
            scratch_shapes=[pltpu.VMEM((K, Fpad), jnp.float32)],
        ),
        compiler_params=pltpu.CompilerParams(
            dimension_semantics=("parallel",),
            vmem_limit_bytes=48 * 1024 * 1024),
        cost_estimate=pl.CostEstimate(flops=flops, transcendentals=0,
                                      bytes_accessed=bytes_accessed),
    )(xb, w_all, b_sum)

    # Flat (row stride Wp) -> NCHW; drops the junk columns (wo >= Wo and
    # f >= Ho*Wp).  Small: touches only Cout output rows.
    out = out_flat[:, :, :Ho * Wp].reshape(N, Cout, Ho, Wp)[:, :, :, :Wo]
    return out


if __name__ == "__main__":
    key = jax.random.PRNGKey(0)

    # Module config (small, consistent with Classifier_Module.__init__)
    inplanes, num_classes = 4, 6
    dilation_series = [2, 4, 6, 8]
    padding_series = [2, 4, 6, 8]
    N, H, W = 2, 16, 16

    keys = jax.random.split(key, 1 + 2 * len(dilation_series))
    x = jax.random.normal(keys[0], (N, inplanes, H, W), dtype=jnp.float32)

    # Deterministic parameter init: weight ~ N(0, 0.01) like the module's init,
    # bias ~ U(-1/sqrt(fan_in), 1/sqrt(fan_in)) like nn.Conv2d's default.
    weights, biases = [], []
    bound = 1.0 / np.sqrt(inplanes * 3 * 3)
    for i in range(len(dilation_series)):
        w = 0.01 * jax.random.normal(keys[1 + 2 * i],
                                     (num_classes, inplanes, 3, 3), dtype=jnp.float32)
        b = jax.random.uniform(keys[2 + 2 * i], (num_classes,), jnp.float32, -bound, bound)
        weights.append(w)
        biases.append(b)

    fwd = jax.jit(functools.partial(classifier_module_forward,
                                    dilation_series=dilation_series,
                                    padding_series=padding_series))
    out = fwd(x, weights, biases)
    out = jax.block_until_ready(out)

    # Sanity check against XLA's dilated conv (same semantics as nn.Conv2d).
    def ref_conv(x, w, b, d, p):
        y = lax.conv_general_dilated(
            x, w, window_strides=(1, 1), padding=[(p, p), (p, p)],
            rhs_dilation=(d, d), dimension_numbers=("NCHW", "OIHW", "NCHW"))
        return y + b[None, :, None, None]

    ref = (ref_conv(x, weights[0], biases[0], dilation_series[0], padding_series[0]) +
           ref_conv(x, weights[1], biases[1], dilation_series[1], padding_series[1]))
    # bf16 MXU operands with f32 accumulation -> loosened tolerance vs f32 ref.
    np.testing.assert_allclose(np.asarray(out), np.asarray(ref), rtol=2e-2, atol=3e-3)

    print("KERNEL_OK")
</pallas_src>

<mosaic_0001>
module attributes {stable_mosaic.version = 11 : i64} {
  func.func @_fused_aspp_kernel(%arg0: i32, %arg1: memref<1x4x640xbf16, #tpu.memory_space<vmem>>, %arg2: memref<6x72xbf16, #tpu.memory_space<vmem>>, %arg3: memref<6x1xf32, #tpu.memory_space<vmem>>, %arg4: memref<1x6x384xf32, #tpu.memory_space<vmem>>, %arg5: memref<72x384xf32, #tpu.memory_space<vmem>>) attributes {dimension_semantics = [#tpu.dimension_semantics<parallel>], iteration_bounds = array<i64: 2>, scalar_prefetch = 0 : i64, scratch_operands = 1 : i64, tpu.core_type = #tpu.core_type<tc>, window_params = [{transform_indices = @transform_0, window_bounds = array<i64: 1, 4, 640>}, {pipeline_mode = #tpu.pipeline_mode<synchronous>, transform_indices = @transform_1, window_bounds = array<i64: 6, 72>}, {pipeline_mode = #tpu.pipeline_mode<synchronous>, transform_indices = @transform_2, window_bounds = array<i64: 6, 1>}, {transform_indices = @transform_3, window_bounds = array<i64: 1, 6, 384>}]} {
    %c0 = arith.constant 0 : index
    %c0_0 = arith.constant 0 : index
    %c50 = arith.constant 50 : index
    %0 = vector.load %arg1[%c0, %c0_0, %c50] : memref<1x4x640xbf16, #tpu.memory_space<vmem>>, vector<1x4x384xbf16>
    %1 = vector.shape_cast %0 : vector<1x4x384xbf16> to vector<4x384xbf16>
    %2 = arith.extf %1 : vector<4x384xbf16> to vector<4x384xf32>
    %c0_1 = arith.constant 0 : index
    %c0_2 = arith.constant 0 : index
    %3 = vector.load %arg5[%c0_1, %c0_2] : memref<72x384xf32, #tpu.memory_space<vmem>>, vector<4x384xf32>
    tpu.vector_store %arg5[%c0_1, %c0_2], %2 {strides = array<i32>} : memref<72x384xf32, #tpu.memory_space<vmem>>, vector<4x384xf32>,
    %c0_3 = arith.constant 0 : index
    %c0_4 = arith.constant 0 : index
    %c52 = arith.constant 52 : index
    %4 = vector.load %arg1[%c0_3, %c0_4, %c52] : memref<1x4x640xbf16, #tpu.memory_space<vmem>>, vector<1x4x384xbf16>
    %5 = vector.shape_cast %4 : vector<1x4x384xbf16> to vector<4x384xbf16>
    %6 = arith.extf %5 : vector<4x384xbf16> to vector<4x384xf32>
    %c4 = arith.constant 4 : index
    %c0_5 = arith.constant 0 : index
    %7 = vector.load %arg5[%c4, %c0_5] : memref<72x384xf32, #tpu.memory_space<vmem>>, vector<4x384xf32>
    tpu.vector_store %arg5[%c4, %c0_5], %6 {strides = array<i32>} : memref<72x384xf32, #tpu.memory_space<vmem>>, vector<4x384xf32>,
    %c0_6 = arith.constant 0 : index
    %c0_7 = arith.constant 0 : index
    %c54 = arith.constant 54 : index
    %8 = vector.load %arg1[%c0_6, %c0_7, %c54] : memref<1x4x640xbf16, #tpu.memory_space<vmem>>, vector<1x4x384xbf16>
    %9 = vector.shape_cast %8 : vector<1x4x384xbf16> to vector<4x384xbf16>
    %10 = arith.extf %9 : vector<4x384xbf16> to vector<4x384xf32>
    %c8 = arith.constant 8 : index
    %c0_8 = arith.constant 0 : index
    %11 = vector.load %arg5[%c8, %c0_8] : memref<72x384xf32, #tpu.memory_space<vmem>>, vector<4x384xf32>
    tpu.vector_store %arg5[%c8, %c0_8], %10 {strides = array<i32>} : memref<72x384xf32, #tpu.memory_space<vmem>>, vector<4x384xf32>,
    %c0_9 = arith.constant 0 : index
    %c0_10 = arith.constant 0 : index
    %c98 = arith.constant 98 : index
    %12 = vector.load %arg1[%c0_9, %c0_10, %c98] : memref<1x4x640xbf16, #tpu.memory_space<vmem>>, vector<1x4x384xbf16>
    %13 = vector.shape_cast %12 : vector<1x4x384xbf16> to vector<4x384xbf16>
    %14 = arith.extf %13 : vector<4x384xbf16> to vector<4x384xf32>
    %c12 = arith.constant 12 : index
    %c0_11 = arith.constant 0 : index
    %15 = vector.load %arg5[%c12, %c0_11] : memref<72x384xf32, #tpu.memory_space<vmem>>, vector<4x384xf32>
    tpu.vector_store %arg5[%c12, %c0_11], %14 {strides = array<i32>} : memref<72x384xf32, #tpu.memory_space<vmem>>, vector<4x384xf32>,
    %c0_12 = arith.constant 0 : index
    %c0_13 = arith.constant 0 : index
    %c100 = arith.constant 100 : index
    %16 = vector.load %arg1[%c0_12, %c0_13, %c100] : memref<1x4x640xbf16, #tpu.memory_space<vmem>>, vector<1x4x384xbf16>
    %17 = vector.shape_cast %16 : vector<1x4x384xbf16> to vector<4x384xbf16>
    %18 = arith.extf %17 : vector<4x384xbf16> to vector<4x384xf32>
    %c16 = arith.constant 16 : index
    %c0_14 = arith.constant 0 : index
    %19 = vector.load %arg5[%c16, %c0_14] : memref<72x384xf32, #tpu.memory_space<vmem>>, vector<4x384xf32>
    tpu.vector_store %arg5[%c16, %c0_14], %18 {strides = array<i32>} : memref<72x384xf32, #tpu.memory_space<vmem>>, vector<4x384xf32>,
    %c0_15 = arith.constant 0 : index
    %c0_16 = arith.constant 0 : index
    %c102 = arith.constant 102 : index
    %20 = vector.load %arg1[%c0_15, %c0_16, %c102] : memref<1x4x640xbf16, #tpu.memory_space<vmem>>, vector<1x4x384xbf16>
    %21 = vector.shape_cast %20 : vector<1x4x384xbf16> to vector<4x384xbf16>
    %22 = arith.extf %21 : vector<4x384xbf16> to vector<4x384xf32>
    %c20 = arith.constant 20 : index
    %c0_17 = arith.constant 0 : index
    %23 = vector.load %arg5[%c20, %c0_17] : memref<72x384xf32, #tpu.memory_space<vmem>>, vector<4x384xf32>
    tpu.vector_store %arg5[%c20, %c0_17], %22 {strides = array<i32>} : memref<72x384xf32, #tpu.memory_space<vmem>>, vector<4x384xf32>,
    %c0_18 = arith.constant 0 : index
    %c0_19 = arith.constant 0 : index
    %c146 = arith.constant 146 : index
    %24 = vector.load %arg1[%c0_18, %c0_19, %c146] : memref<1x4x640xbf16, #tpu.memory_space<vmem>>, vector<1x4x384xbf16>
    %25 = vector.shape_cast %24 : vector<1x4x384xbf16> to vector<4x384xbf16>
    %26 = arith.extf %25 : vector<4x384xbf16> to vector<4x384xf32>
    %c24 = arith.constant 24 : index
    %c0_20 = arith.constant 0 : index
    %27 = vector.load %arg5[%c24, %c0_20] : memref<72x384xf32, #tpu.memory_space<vmem>>, vector<4x384xf32>
    tpu.vector_store %arg5[%c24, %c0_20], %26 {strides = array<i32>} : memref<72x384xf32, #tpu.memory_space<vmem>>, vector<4x384xf32>,
    %c0_21 = arith.constant 0 : index
    %c0_22 = arith.constant 0 : index
    %c148 = arith.constant 148 : index
    %28 = vector.load %arg1[%c0_21, %c0_22, %c148] : memref<1x4x640xbf16, #tpu.memory_space<vmem>>, vector<1x4x384xbf16>
    %29 = vector.shape_cast %28 : vector<1x4x384xbf16> to vector<4x384xbf16>
    %30 = arith.extf %29 : vector<4x384xbf16> to vector<4x384xf32>
    %c28 = arith.constant 28 : index
    %c0_23 = arith.constant 0 : index
    %31 = vector.load %arg5[%c28, %c0_23] : memref<72x384xf32, #tpu.memory_space<vmem>>, vector<4x384xf32>
    tpu.vector_store %arg5[%c28, %c0_23], %30 {strides = array<i32>} : memref<72x384xf32, #tpu.memory_space<vmem>>, vector<4x384xf32>,
    %c0_24 = arith.constant 0 : index
    %c0_25 = arith.constant 0 : index
    %c150 = arith.constant 150 : index
    %32 = vector.load %arg1[%c0_24, %c0_25, %c150] : memref<1x4x640xbf16, #tpu.memory_space<vmem>>, vector<1x4x384xbf16>
    %33 = vector.shape_cast %32 : vector<1x4x384xbf16> to vector<4x384xbf16>
    %34 = arith.extf %33 : vector<4x384xbf16> to vector<4x384xf32>
    %c32 = arith.constant 32 : index
    %c0_26 = arith.constant 0 : index
    %35 = vector.load %arg5[%c32, %c0_26] : memref<72x384xf32, #tpu.memory_space<vmem>>, vector<4x384xf32>
    tpu.vector_store %arg5[%c32, %c0_26], %34 {strides = array<i32>} : memref<72x384xf32, #tpu.memory_space<vmem>>, vector<4x384xf32>,
    %c0_27 = arith.constant 0 : index
    %c0_28 = arith.constant 0 : index
    %c0_29 = arith.constant 0 : index
    %36 = vector.load %arg1[%c0_27, %c0_28, %c0_29] : memref<1x4x640xbf16, #tpu.memory_space<vmem>>, vector<1x4x384xbf16>
    %37 = vector.shape_cast %36 : vector<1x4x384xbf16> to vector<4x384xbf16>
    %38 = arith.extf %37 : vector<4x384xbf16> to vector<4x384xf32>
    %c36 = arith.constant 36 : index
    %c0_30 = arith.constant 0 : index
    %39 = vector.load %arg5[%c36, %c0_30] : memref<72x384xf32, #tpu.memory_space<vmem>>, vector<4x384xf32>
    tpu.vector_store %arg5[%c36, %c0_30], %38 {strides = array<i32>} : memref<72x384xf32, #tpu.memory_space<vmem>>, vector<4x384xf32>,
    %c0_31 = arith.constant 0 : index
    %c0_32 = arith.constant 0 : index
    %c4_33 = arith.constant 4 : index
    %40 = vector.load %arg1[%c0_31, %c0_32, %c4_33] : memref<1x4x640xbf16, #tpu.memory_space<vmem>>, vector<1x4x384xbf16>
    %41 = vector.shape_cast %40 : vector<1x4x384xbf16> to vector<4x384xbf16>
    %42 = arith.extf %41 : vector<4x384xbf16> to vector<4x384xf32>
    %c40 = arith.constant 40 : index
    %c0_34 = arith.constant 0 : index
    %43 = vector.load %arg5[%c40, %c0_34] : memref<72x384xf32, #tpu.memory_space<vmem>>, vector<4x384xf32>
    tpu.vector_store %arg5[%c40, %c0_34], %42 {strides = array<i32>} : memref<72x384xf32, #tpu.memory_space<vmem>>, vector<4x384xf32>,
    %c0_35 = arith.constant 0 : index
    %c0_36 = arith.constant 0 : index
    %c8_37 = arith.constant 8 : index
    %44 = vector.load %arg1[%c0_35, %c0_36, %c8_37] : memref<1x4x640xbf16, #tpu.memory_space<vmem>>, vector<1x4x384xbf16>
    %45 = vector.shape_cast %44 : vector<1x4x384xbf16> to vector<4x384xbf16>
    %46 = arith.extf %45 : vector<4x384xbf16> to vector<4x384xf32>
    %c44 = arith.constant 44 : index
    %c0_38 = arith.constant 0 : index
    %47 = vector.load %arg5[%c44, %c0_38] : memref<72x384xf32, #tpu.memory_space<vmem>>, vector<4x384xf32>
    tpu.vector_store %arg5[%c44, %c0_38], %46 {strides = array<i32>} : memref<72x384xf32, #tpu.memory_space<vmem>>, vector<4x384xf32>,
    %c0_39 = arith.constant 0 : index
    %c0_40 = arith.constant 0 : index
    %c96 = arith.constant 96 : index
    %48 = vector.load %arg1[%c0_39, %c0_40, %c96] : memref<1x4x640xbf16, #tpu.memory_space<vmem>>, vector<1x4x384xbf16>
    %49 = vector.shape_cast %48 : vector<1x4x384xbf16> to vector<4x384xbf16>
    %50 = arith.extf %49 : vector<4x384xbf16> to vector<4x384xf32>
    %c48 = arith.constant 48 : index
    %c0_41 = arith.constant 0 : index
    %51 = vector.load %arg5[%c48, %c0_41] : memref<72x384xf32, #tpu.memory_space<vmem>>, vector<4x384xf32>
    tpu.vector_store %arg5[%c48, %c0_41], %50 {strides = array<i32>} : memref<72x384xf32, #tpu.memory_space<vmem>>, vector<4x384xf32>,
    %c0_42 = arith.constant 0 : index
    %c0_43 = arith.constant 0 : index
    %c100_44 = arith.constant 100 : index
    %52 = vector.load %arg1[%c0_42, %c0_43, %c100_44] : memref<1x4x640xbf16, #tpu.memory_space<vmem>>, vector<1x4x384xbf16>
    %53 = vector.shape_cast %52 : vector<1x4x384xbf16> to vector<4x384xbf16>
    %54 = arith.extf %53 : vector<4x384xbf16> to vector<4x384xf32>
    %c52_45 = arith.constant 52 : index
    %c0_46 = arith.constant 0 : index
    %55 = vector.load %arg5[%c52_45, %c0_46] : memref<72x384xf32, #tpu.memory_space<vmem>>, vector<4x384xf32>
    tpu.vector_store %arg5[%c52_45, %c0_46], %54 {strides = array<i32>} : memref<72x384xf32, #tpu.memory_space<vmem>>, vector<4x384xf32>,
    %c0_47 = arith.constant 0 : index
    %c0_48 = arith.constant 0 : index
    %c104 = arith.constant 104 : index
    %56 = vector.load %arg1[%c0_47, %c0_48, %c104] : memref<1x4x640xbf16, #tpu.memory_space<vmem>>, vector<1x4x384xbf16>
    %57 = vector.shape_cast %56 : vector<1x4x384xbf16> to vector<4x384xbf16>
    %58 = arith.extf %57 : vector<4x384xbf16> to vector<4x384xf32>
    %c56 = arith.constant 56 : index
    %c0_49 = arith.constant 0 : index
    %59 = vector.load %arg5[%c56, %c0_49] : memref<72x384xf32, #tpu.memory_space<vmem>>, vector<4x384xf32>
    tpu.vector_store %arg5[%c56, %c0_49], %58 {strides = array<i32>} : memref<72x384xf32, #tpu.memory_space<vmem>>, vector<4x384xf32>,
    %c0_50 = arith.constant 0 : index
    %c0_51 = arith.constant 0 : index
    %c192 = arith.constant 192 : index
    %60 = vector.load %arg1[%c0_50, %c0_51, %c192] : memref<1x4x640xbf16, #tpu.memory_space<vmem>>, vector<1x4x384xbf16>
    %61 = vector.shape_cast %60 : vector<1x4x384xbf16> to vector<4x384xbf16>
    %62 = arith.extf %61 : vector<4x384xbf16> to vector<4x384xf32>
    %c60 = arith.constant 60 : index
    %c0_52 = arith.constant 0 : index
    %63 = vector.load %arg5[%c60, %c0_52] : memref<72x384xf32, #tpu.memory_space<vmem>>, vector<4x384xf32>
    tpu.vector_store %arg5[%c60, %c0_52], %62 {strides = array<i32>} : memref<72x384xf32, #tpu.memory_space<vmem>>, vector<4x384xf32>,
    %c0_53 = arith.constant 0 : index
    %c0_54 = arith.constant 0 : index
    %c196 = arith.constant 196 : index
    %64 = vector.load %arg1[%c0_53, %c0_54, %c196] : memref<1x4x640xbf16, #tpu.memory_space<vmem>>, vector<1x4x384xbf16>
    %65 = vector.shape_cast %64 : vector<1x4x384xbf16> to vector<4x384xbf16>
    %66 = arith.extf %65 : vector<4x384xbf16> to vector<4x384xf32>
    %c64 = arith.constant 64 : index
    %c0_55 = arith.constant 0 : index
    %67 = vector.load %arg5[%c64, %c0_55] : memref<72x384xf32, #tpu.memory_space<vmem>>, vector<4x384xf32>
    tpu.vector_store %arg5[%c64, %c0_55], %66 {strides = array<i32>} : memref<72x384xf32, #tpu.memory_space<vmem>>, vector<4x384xf32>,
    %c0_56 = arith.constant 0 : index
    %c0_57 = arith.constant 0 : index
    %c200 = arith.constant 200 : index
    %68 = vector.load %arg1[%c0_56, %c0_57, %c200] : memref<1x4x640xbf16, #tpu.memory_space<vmem>>, vector<1x4x384xbf16>
    %69 = vector.shape_cast %68 : vector<1x4x384xbf16> to vector<4x384xbf16>
    %70 = arith.extf %69 : vector<4x384xbf16> to vector<4x384xf32>
    %c68 = arith.constant 68 : index
    %c0_58 = arith.constant 0 : index
    %71 = vector.load %arg5[%c68, %c0_58] : memref<72x384xf32, #tpu.memory_space<vmem>>, vector<4x384xf32>
    tpu.vector_store %arg5[%c68, %c0_58], %70 {strides = array<i32>} : memref<72x384xf32, #tpu.memory_space<vmem>>, vector<4x384xf32>,
    %c0_59 = arith.constant 0 : index
    %c0_60 = arith.constant 0 : index
    %72 = vector.load %arg2[%c0_59, %c0_60] : memref<6x72xbf16, #tpu.memory_space<vmem>>, vector<6x72xbf16>
    %c0_61 = arith.constant 0 : index
    %c0_62 = arith.constant 0 : index
    %73 = vector.load %arg5[%c0_61, %c0_62] : memref<72x384xf32, #tpu.memory_space<vmem>>, vector<72x384xf32>
    %74 = arith.truncf %73 : vector<72x384xf32> to vector<72x384xbf16>
    %cst = arith.constant dense<0.000000e+00> : vector<6x384xf32>
    %75 = tpu.matmul %72, %74, %cst {dimension_numbers = #tpu.dot_dimension_numbers<[1], [0], [0], [1], [0, 0, 1, 1], [], []>} : vector<6x72xbf16>, vector<72x384xbf16>, vector<6x384xf32> -> vector<6x384xf32>
    %c0_63 = arith.constant 0 : index
    %c0_64 = arith.constant 0 : index
    %76 = vector.load %arg3[%c0_63, %c0_64] : memref<6x1xf32, #tpu.memory_space<vmem>>, vector<6x1xf32>
    %77 = vector.broadcast %76 : vector<6x1xf32> to vector<6x384xf32>
    %78 = arith.addf %75, %77 : vector<6x384xf32>
    %c0_65 = arith.constant 0 : index
    %c0_66 = arith.constant 0 : index
    %c0_67 = arith.constant 0 : index
    %79 = vector.load %arg4[%c0_65, %c0_66, %c0_67] : memref<1x6x384xf32, #tpu.memory_space<vmem>>, vector<1x6x384xf32>
    %80 = vector.shape_cast %79 : vector<1x6x384xf32> to vector<6x384xf32>
    %81 = vector.shape_cast %78 : vector<6x384xf32> to vector<1x6x384xf32>
    tpu.vector_store %arg4[%c0_65, %c0_66, %c0_67], %81 {strides = array<i32>} : memref<1x6x384xf32, #tpu.memory_space<vmem>>, vector<1x6x384xf32>,
    return
  }
  func.func @transform_0(%arg0: i32) -> (i32, i32, i32) {
    %c0_i32 = arith.constant 0 : i32
    %c0_i32_0 = arith.constant 0 : i32
    %c0_i32_1 = arith.constant 0 : i32
    return %arg0, %c0_i32, %c0_i32_0 : i32, i32, i32
  }
  func.func @transform_1(%arg0: i32) -> (i32, i32) {
    %c0_i32 = arith.constant 0 : i32
    %c0_i32_0 = arith.constant 0 : i32
    %c0_i32_1 = arith.constant 0 : i32
    return %c0_i32, %c0_i32_0 : i32, i32
  }
  func.func @transform_2(%arg0: i32) -> (i32, i32) {
    %c0_i32 = arith.constant 0 : i32
    %c0_i32_0 = arith.constant 0 : i32
    %c0_i32_1 = arith.constant 0 : i32
    return %c0_i32, %c0_i32_0 : i32, i32
  }
  func.func @transform_3(%arg0: i32) -> (i32, i32, i32) {
    %c0_i32 = arith.constant 0 : i32
    %c0_i32_0 = arith.constant 0 : i32
    %c0_i32_1 = arith.constant 0 : i32
    return %arg0, %c0_i32, %c0_i32_0 : i32, i32, i32
  }
}

</mosaic_0001>

<bundles_post_ra>
// kernel: classifier_module_forward.1
= control target key start
LH: loop header
LB: loop body
LE: loop exit
PB: predicated region body
PF: predicated region fallthrough
CT: control target
= control target key end

     0   :  { %s1089_s12 = smov 0   ;;  %s1194_s0 = inlined_call_operand.vmem [shape: bf16[2,4,640], index: 0, kind: input, shape index: {}]   ;;  %s1195_s1 = inlined_call_operand.vmem [shape: bf16[6,72], index: 1, kind: input, shape index: {}]   ;;  %s1196_s2 = inlined_call_operand.vmem [shape: f32[6,1], index: 2, kind: input, shape index: {}]   ;;  %s1197_s3 = inlined_call_operand.vmem [shape: f32[2,6,384], index: 3, kind: output, shape index: {}]  }
   0x1 LB: > { %s810_s13 = sadd.s32 4294967295, %s1048_s12   ;;  %p814_p0 = scmp.ge.s32.totalorder %s1048_s12, 1  ;;  %s1048_s12 = sphi %s1089_s12, %s13_s12  }
   0x2   : > { %p137_p1 = scmp.lt.s32.totalorder %s1048_s12, 3 }
   0x4   : > { %p138_p2 = pnand %p814_p0, %p137_p1 }
   0x5   : > { %p161_p3 = scmp.lt.s32.totalorder (!%p138_p2), %s810_s13, 1  ;;  %s1050_s18 = smov (!%p138_p2), 74   ;;  %v1054_v14 = vmov (!%p138_p2), 0.0   ;;  %v1067_v32 = vmov (!%p138_p2), 0   ;;  %vm1068_vm0 = vmmov (!%p138_p2), 0   ;;  %vm237_vm1 = vcmask (!%p138_p2), 605184  }
   0x6   : > { %141 = sbr.rel (%p138_p2) target bundleno = 437 (0x1b5), region = 32  ;;  %s1051_s19 = smov (!%p138_p2), 78   ;;  %828 = vmatprep.subr.bf16.mxu1 (!%p138_p2), %v1054_v14  ;;  %703 = vmatprep.mubr.bf16.mxu0 (!%p138_p2), %v1067_v32  ;;  %v651_v33 = vld [vmem:[%s1196_s2] sm:$0x3f] (!%p138_p2)  ;;  %vm187_vm2 = vcmask (!%p138_p2), 637952   ;;  %vm262_vm3 = vcmask (!%p138_p2), 244736  }
   0x7   : > { %s1052_s20 = smov (!%p138_p2), 30   ;;  %s1053_s21 = smov (!%p138_p2), 76   ;;  %838 = vmatprep.mubr.msk.bf16.mxu1 (!%p138_p2), %vm1068_vm0, %v1054_v14  ;;  %1041 = vset.pattern.permute.xlu0 (!%p138_p2), %v1067_v32  ;;  %vm212_vm4 = vcmask (!%p138_p2), 621568   ;;  %vm312_vm5 = vcmask (!%p138_p2), 211968   ;;  %vm287_vm6 = vcmask (!%p138_p2), 228352   ;;  %vm362_vm7 = vcmask (!%p138_p2), 883712  }
   0x8   : > { %s1055_s22 = smov (!%p138_p2), 26   ;;  %s1056_s23 = smov (!%p138_p2), 28   ;;  %vm337_vm8 = vcmask (!%p138_p2), 900096   ;;  %vm424_vm9 = vcmask (!%p138_p2), 1014784   ;;  %vm387_vm10 = vcmask (!%p138_p2), 867328   ;;  %vm449_vm11 = vcmask (!%p138_p2), 982016  }
   0x9   : > { %s1057_s24 = smov (!%p138_p2), 108   ;;  %s1058_s25 = smov (!%p138_p2), 110   ;;  %vm474_vm12 = vcmask (!%p138_p2), 261120   ;;  %vm548_vm13 = vcmask (!%p138_p2), 523264   ;;  %vm523_vm14 = vcmask (!%p138_p2), 195584   ;;  %vm573_vm15 = vcmask (!%p138_p2), 490496  }
   0xa   : > { %s1059_s26 = smov (!%p138_p2), 124   ;;  %s1060_s27 = smov (!%p138_p2), 106   ;;  %vm598_vm0 = vcmask (!%p138_p2), 457728  }
   0xb   : > { %s1061_s28 = smov (!%p138_p2), 120   ;;  %s1062_s29 = smov (!%p138_p2), 32  }
   0xc   : > { %s1063_s30 = smov (!%p138_p2), 64   ;;  %s1064_s4 = smov (!%p138_p2), 24  }
   0xd   : > { %s1199_s13 = smov (!%p161_p3, %s810_s13), 1  ;;  %s1065_s5 = smov 60  }
   0xe   : > { %s842_s14 = smul.u32 10, %s1199_s13  ;;  %s1066_s6 = smov 56  }
   0xf   : > { %s843_s11 = smul.u32 24, %s1199_s13 }
  0x10   : > { %s1103_s17 = scalar_lea.vmem %s1194_s0, %s842_s14 }
  0x11   : > { %v222_v0 = vld [vmem:[%s1103_s17] sm:$0xff]  ;;  %s170_s16 = scalar_lea.vmem %s1197_s3, %s843_s11 }
  0x12   : > { %v223_v1 = vunpack.c.l.bf16 %v222_v0  ;;  %v224_v2 = vunpack.c.h.bf16 %v222_v0  ;;  %v347_v11 = vld [vmem:[%s1103_s17 + $0x2] sm:$0xff] }
  0x13   : > { %v1111_v12 = vunpack.c.l.bf16 %v347_v11  ;;  %v349_v13 = vunpack.c.h.bf16 %v347_v11  ;;  %v397_v20 = vld [vmem:[%s1103_s17] sm:$0x3f] }
  0x14   : > { %v227_v3 = vcombine.high %v223_v1, %v223_v1  ;;  %v253_v4 = vcombine.low %v224_v2, %v224_v2  ;;  %v228_v6 = vcombine.high %v224_v2, %v224_v2  ;;  %v202_v8 = vcombine.low %v223_v1, %v223_v1 }
  0x15   : > { %v353_v15 = vcombine.low %v349_v13, %v349_v13  ;;  %v327_v16 = vcombine.high %v1111_v12, %v1111_v12  ;;  %v352_v19 = vcombine.low %v1111_v12, %v1111_v12  ;;  %v328_v21 = vcombine.high %v349_v13, %v349_v13 }
  0x16   : > { %v1106_v5 = vpack.i.bf16 %v224_v2, %v227_v3  ;;  %v886_v7 = vpack.i.bf16 %v253_v4, %v223_v1  ;;  %v896_v9 = vpack.i.bf16 %v224_v2, %v202_v8  ;;  %v891_v10 = vpack.i.bf16 %v228_v6, %v223_v1 }
  0x17   : > { %v926_v17 = vpack.i.bf16 %v353_v15, %v1111_v12  ;;  %v921_v18 = vpack.i.bf16 %v349_v13, %v327_v16  ;;  %v398_v22 = vunpack.c.l.bf16 %v397_v20  ;;  %v399_v23 = vunpack.c.h.bf16 %v397_v20 }
  0x18   : > { %882 = vrot.lane.b32.xlu1 %v1106_v5, %s1050_s18  ;;  %872 = vrot.lane.b32.xlu0 %v1106_v5, %s1051_s19  ;;  %v946_v24 = vpack.i.bf16 %v349_v13, %v352_v19  ;;  %v941_v25 = vpack.i.bf16 %v328_v21, %v1111_v12  ;;  %v1026_v28 = vpack.i.bf16 %v328_v21, %v349_v13 }
  0x19   : > { %407 = vst [vmem:[#allocation2 + $0x68] sm:$0xf0] %v398_v22  ;;  %v402_v26 = vcombine.low %v398_v22, %v398_v22  ;;  %v403_v27 = vcombine.low %v399_v23, %v399_v23  ;;  %v1021_v29 = vpack.i.bf16 %v327_v16, %v1111_v12  ;;  %v1036_v30 = vpack.i.bf16 %v349_v13, %v353_v15 }
  0x1a   : > { %v1031_v31 = vpack.i.bf16 %v1111_v12, %v352_v19 }
  0x1b   : > { %406 = vst [vmem:[#allocation2 + $0x60] sm:$0xf0] %v402_v26  ;;  %408 = vst [vmem:[#allocation2 + $0x70] sm:$0xf0] %v403_v27 }
  0x1c   : > { %887 = vrot.lane.b32.xlu1 %v886_v7, %s1052_s20  ;;  %877 = vrot.lane.b32.xlu0 %v886_v7, %s1053_s21 }
  0x20   : > { %897 = vrot.lane.b32.xlu1 %v896_v9, %s1053_s21  ;;  %892 = vrot.lane.b32.xlu0 %v891_v10, %s1051_s19 }
  0x24   : > { %907 = vrot.lane.b32.xlu1 %v896_v9, %s1052_s20  ;;  %902 = vrot.lane.b32.xlu0 %v891_v10, %s1050_s18 }
  0x28   : > { %917 = vrot.lane.b32.xlu1 %v886_v7, %s1055_s22  ;;  %912 = vrot.lane.b32.xlu0 %v1106_v5, %s1056_s23 }
  0x2c   : > { %927 = vrot.lane.b32.xlu1 %v926_v17, %s1057_s24  ;;  %922 = vrot.lane.b32.xlu0 %v921_v18, %s1058_s25 }
  0x30   : > { %937 = vrot.lane.b32.xlu1 %v896_v9, %s1055_s22  ;;  %932 = vrot.lane.b32.xlu0 %v891_v10, %s1056_s23 }
  0x34   : > { %947 = vrot.lane.b32.xlu1 %v946_v24, %s1057_s24  ;;  %942 = vrot.lane.b32.xlu0 %v941_v25, %s1058_s25 }
  0x38   : > { %957 = vrot.lane.b32.xlu1 %v1106_v5, %s1059_s26  ;;  %952 = vrot.lane.b32.xlu0 %v921_v18, %s1060_s27 }
  0x3c   : > { %967 = vrot.lane.b32.xlu1 %v941_v25, %s1060_s27  ;;  %962 = vrot.lane.b32.xlu0 %v886_v7, %s1061_s28 }
  0x40   : > { %977 = vrot.lane.b32.xlu1 %v896_v9, %s1061_s28  ;;  %972 = vrot.lane.b32.xlu0 %v891_v10, %s1059_s26 }
  0x44   : > { %987 = vrot.lane.b32.xlu1 %v886_v7, %s1056_s23  ;;  %982 = vrot.lane.b32.xlu0 %v1106_v5, %s1062_s29 }
  0x48   : > { %997 = vrot.lane.b32.xlu1 %v926_v17, %s1063_s30  ;;  %992 = vrot.lane.b32.xlu0 %v1106_v5, %s1064_s4 }
  0x4c   : > { %1007 = vrot.lane.b32.xlu1 %v896_v9, %s1056_s23  ;;  %1002 = vrot.lane.b32.xlu0 %v891_v10, %s1062_s29 }
  0x50   : > { %1017 = vrot.lane.b32.xlu1 %v946_v24, %s1063_s30  ;;  %1012 = vrot.lane.b32.xlu0 %v891_v10, %s1064_s4 }
  0x54   : > { %1027 = vrot.lane.b32.xlu1 %v1026_v28, %s1065_s5  ;;  %1022 = vrot.lane.b32.xlu0 %v1021_v29, %s1065_s5 }
  0x58   : > { %1037 = vrot.lane.b32.xlu1 %v1036_v30, %s1066_s6  ;;  %1032 = vrot.lane.b32.xlu0 %v1031_v31, %s1066_s6 }
  0x5c   : > { %654 = vperm.xlu0 %1041, %v651_v33  }
  0x8a   : > { %v883_v34 = vpop.permute.xlu1 %882  ;;  %v873_v35 = vpop.permute.xlu0 %872 }
  0x8b   : > { %v885_v36 = vunpack.i.h.bf16 %v883_v34  ;;  %v884_v37 = vunpack.i.l.bf16 %v883_v34  ;;  %v875_v38 = vunpack.i.h.bf16 %v873_v35  ;;  %v874_v39 = vunpack.i.l.bf16 %v873_v35 }
  0x8d   : > { %v239_v40 = vsel %vm237_vm1, %v884_v37, %v885_v36  ;;  %v189_v41 = vsel %vm187_vm2, %v874_v39, %v875_v38 }
  0x8e   : > { %245 = vst [vmem:[#allocation2 + $0x20] sm:$0xf] %v239_v40  ;;  %195 = vst [vmem:[#allocation2 + $0x8] sm:$0xf] %v189_v41  ;;  %v888_v42 = vpop.permute.xlu1 %887  ;;  %v878_v43 = vpop.permute.xlu0 %877 }
  0x8f   : > { %v890_v44 = vunpack.i.h.bf16 %v888_v42  ;;  %v889_v45 = vunpack.i.l.bf16 %v888_v42  ;;  %v880_v46 = vunpack.i.h.bf16 %v878_v43  ;;  %v879_v47 = vunpack.i.l.bf16 %v878_v43 }
  0x91   : > { %v264_v48 = vsel %vm262_vm3, %v889_v45, %v890_v44  ;;  %v214_v49 = vsel %vm212_vm4, %v879_v47, %v880_v46 }
  0x92   : > { %270 = vst [vmem:[#allocation2 + $0x20] sm:$0xf0] %v264_v48  ;;  %220 = vst [vmem:[#allocation2 + $0x8] sm:$0xf0] %v214_v49  ;;  %v898_v50 = vpop.permute.xlu1 %897  ;;  %v893_v51 = vpop.permute.xlu0 %892 }
  0x93   : > { %v900_v52 = vunpack.i.h.bf16 %v898_v50  ;;  %v899_v53 = vunpack.i.l.bf16 %v898_v50  ;;  %v895_v54 = vunpack.i.h.bf16 %v893_v51  ;;  %v894_v55 = vunpack.i.l.bf16 %v893_v51 }
  0x95   : > { %v213_v56 = vsel %vm212_vm4, %v899_v53, %v879_v47  ;;  %v215_v57 = vsel %vm212_vm4, %v880_v46, %v900_v52  ;;  %v188_v58 = vsel %vm187_vm2, %v894_v55, %v874_v39  ;;  %v190_v59 = vsel %vm187_vm2, %v875_v38, %v895_v54 }
  0x96   : > { %219 = vst [vmem:[#allocation2] sm:$0xf0] %v213_v56  ;;  %221 = vst [vmem:[#allocation2 + $0x10] sm:$0xf0] %v215_v57  ;;  %v908_v60 = vpop.permute.xlu1 %907  ;;  %v903_v61 = vpop.permute.xlu0 %902  ;;  %vm657_vm2 = vcmask 588800  }
  0x97   : > { %194 = vst [vmem:[#allocation2] sm:$0xf] %v188_v58  ;;  %196 = vst [vmem:[#allocation2 + $0x10] sm:$0xf] %v190_v59  ;;  %v910_v62 = vunpack.i.h.bf16 %v908_v60  ;;  %v909_v63 = vunpack.i.l.bf16 %v908_v60  ;;  %v905_v0 = vunpack.i.h.bf16 %v903_v61  ;;  %v904_v1 = vunpack.i.l.bf16 %v903_v61 }
  0x99   : > { %v265_v2 = vsel %vm262_vm3, %v890_v44, %v910_v62  ;;  %v263_v3 = vsel %vm262_vm3, %v909_v63, %v889_v45  ;;  %v240_v4 = vsel %vm237_vm1, %v885_v36, %v905_v0  ;;  %v238_v5 = vsel %vm237_vm1, %v904_v1, %v884_v37  ;;  %v610_v6 = vld [vmem:[#allocation2 + $0x8] sm:$0xff]  ;;  %v613_v7 = vld [vmem:[#allocation2 + $0x20] sm:$0xff] }
  0x9a   : > { %271 = vst [vmem:[#allocation2 + $0x28] sm:$0xf0] %v265_v2  ;;  %269 = vst [vmem:[#allocation2 + $0x18] sm:$0xf0] %v263_v3  ;;  %v918_v8 = vpop.permute.xlu1 %917  ;;  %v913_v9 = vpop.permute.xlu0 %912  ;;  %v637_v10 = vpack.c.bf16 %v613_v7, %v610_v6  ;;  %vm661_vm1 = vcmask 1043456  }
  0x9b   : > { %246 = vst [vmem:[#allocation2 + $0x28] sm:$0xf] %v240_v4  ;;  %244 = vst [vmem:[#allocation2 + $0x18] sm:$0xf] %v238_v5  ;;  %v920_v11 = vunpack.i.h.bf16 %v918_v8  ;;  %v919_v12 = vunpack.i.l.bf16 %v918_v8  ;;  %v915_v13 = vunpack.i.h.bf16 %v913_v9  ;;  %v914_v15 = vunpack.i.l.bf16 %v913_v9 }
  0x9c   : > { %671 = vmatprep.subr.bf16.mxu0 %v637_v10 }
  0x9d   : > { %v314_v16 = vsel %vm312_vm5, %v919_v12, %v920_v11  ;;  %v289_v17 = vsel %vm287_vm6, %v914_v15, %v915_v13 }
  0x9e   : > { %320 = vst [vmem:[#allocation2 + $0x38] sm:$0xf0] %v314_v16  ;;  %295 = vst [vmem:[#allocation2 + $0x38] sm:$0xf] %v289_v17  ;;  %v928_v18 = vpop.permute.xlu1 %927  ;;  %v923_v19 = vpop.permute.xlu0 %922  ;;  %v609_v24 = vld [vmem:[#allocation2] sm:$0xff]  ;;  %v611_v28 = vld [vmem:[#allocation2 + $0x10] sm:$0xff] }
  0x9f   : > { %v930_v20 = vunpack.i.h.bf16 %v928_v18  ;;  %v929_v21 = vunpack.i.l.bf16 %v928_v18  ;;  %v925_v22 = vunpack.i.h.bf16 %v923_v19  ;;  %v924_v23 = vunpack.i.l.bf16 %v923_v19 }
  0xa1   : > { %v364_v25 = vsel %vm362_vm7, %v929_v21, %v930_v20  ;;  %v339_v26 = vsel %vm337_vm8, %v924_v23, %v925_v22 }
  0xa2   : > { %v612_v27 = vld [vmem:[#allocation2 + $0x18] sm:$0xff]  ;;  %v614_v29 = vld [vmem:[#allocation2 + $0x28] sm:$0xff]  ;;  %370 = vst [vmem:[#allocation2 + $0x50] sm:$0xf0] %v364_v25  ;;  %345 = vst [vmem:[#allocation2 + $0x50] sm:$0xf] %v339_v26  ;;  %v938_v30 = vpop.permute.xlu1 %937  ;;  %v933_v31 = vpop.permute.xlu0 %932 }
  0xa3   : > { %v636_v32 = vpack.c.bf16 %v612_v27, %v609_v24  ;;  %v638_v33 = vpack.c.bf16 %v614_v29, %v611_v28  ;;  %v940_v34 = vunpack.i.h.bf16 %v938_v30  ;;  %v939_v35 = vunpack.i.l.bf16 %v938_v30 }
  0xa4   : > { %v935_v36 = vunpack.i.h.bf16 %v933_v31  ;;  %v934_v37 = vunpack.i.l.bf16 %v933_v31 }
  0xa5   : > { %672 = vmatpush1.bf16.msra.mxu0 %v636_v32  ;;  %829 = vmatpush3.bf16.msra.mxu1 %v638_v33  ;;  %v313_v38 = vsel %vm312_vm5, %v939_v35, %v919_v12  ;;  %v315_v39 = vsel %vm312_vm5, %v920_v11, %v940_v34  ;;  %v616_v52 = vld [vmem:[#allocation2 + $0x38] sm:$0xff] }
  0xa6   : > { %v288_v40 = vsel %vm287_vm6, %v934_v37, %v914_v15  ;;  %v290_v41 = vsel %vm287_vm6, %v915_v13, %v935_v36  ;;  %830 = vmatprep.subr.bf16.mxu1 %v1054_v14  ;;  %319 = vst [vmem:[#allocation2 + $0x30] sm:$0xf0] %v313_v38  ;;  %321 = vst [vmem:[#allocation2 + $0x40] sm:$0xf0] %v315_v39  ;;  %v948_v42 = vpop.permute.xlu1 %947  ;;  %v943_v43 = vpop.permute.xlu0 %942 }
  0xa7   : > { %294 = vst [vmem:[#allocation2 + $0x30] sm:$0xf] %v288_v40  ;;  %296 = vst [vmem:[#allocation2 + $0x40] sm:$0xf] %v290_v41  ;;  %v950_v44 = vunpack.i.h.bf16 %v948_v42  ;;  %v949_v45 = vunpack.i.l.bf16 %v948_v42  ;;  %v945_v46 = vunpack.i.h.bf16 %v943_v43  ;;  %v944_v47 = vunpack.i.l.bf16 %v943_v43 }
  0xa9   : > { %v363_v48 = vsel %vm362_vm7, %v949_v45, %v929_v21  ;;  %v365_v49 = vsel %vm362_vm7, %v930_v20, %v950_v44  ;;  %v338_v50 = vsel %vm337_vm8, %v944_v47, %v924_v23  ;;  %v340_v51 = vsel %vm337_vm8, %v925_v22, %v945_v46  ;;  %v619_v53 = vld [vmem:[#allocation2 + $0x50] sm:$0xff] }
  0xaa   : > { %369 = vst [vmem:[#allocation2 + $0x48] sm:$0xf0] %v363_v48  ;;  %371 = vst [vmem:[#allocation2 + $0x58] sm:$0xf0] %v365_v49  ;;  %v958_v54 = vpop.permute.xlu1 %957  ;;  %v953_v55 = vpop.permute.xlu0 %952  ;;  %v640_v56 = vpack.c.bf16 %v619_v53, %v616_v52 }
  0xab   : > { %344 = vst [vmem:[#allocation2 + $0x48] sm:$0xf] %v338_v50  ;;  %346 = vst [vmem:[#allocation2 + $0x58] sm:$0xf] %v340_v51  ;;  %v960_v57 = vunpack.i.h.bf16 %v958_v54  ;;  %v959_v58 = vunpack.i.l.bf16 %v958_v54  ;;  %v955_v59 = vunpack.i.h.bf16 %v953_v55  ;;  %v954_v60 = vunpack.i.l.bf16 %v953_v55 }
  0xac   : > { %673 = vmatprep.subr.bf16.mxu0 %v640_v56 }
  0xad   : > { %v426_v61 = vsel %vm424_vm9, %v959_v58, %v960_v57  ;;  %v389_v62 = vsel %vm387_vm10, %v954_v60, %v955_v59 }
  0xae   : > { %432 = vst [vmem:[#allocation2 + $0x80] sm:$0xf] %v426_v61  ;;  %395 = vst [vmem:[#allocation2 + $0x68] sm:$0xf] %v389_v62  ;;  %v968_v63 = vpop.permute.xlu1 %967  ;;  %v963_v0 = vpop.permute.xlu0 %962  ;;  %v615_v5 = vld [vmem:[#allocation2 + $0x30] sm:$0xff]  ;;  %v617_v10 = vld [vmem:[#allocation2 + $0x40] sm:$0xff] }
  0xaf   : > { %v970_v1 = vunpack.i.h.bf16 %v968_v63  ;;  %v969_v2 = vunpack.i.l.bf16 %v968_v63  ;;  %v965_v3 = vunpack.i.h.bf16 %v963_v0  ;;  %v964_v4 = vunpack.i.l.bf16 %v963_v0 }
  0xb1   : > { %v388_v6 = vsel %vm387_vm10, %v969_v2, %v954_v60  ;;  %v390_v7 = vsel %vm387_vm10, %v955_v59, %v970_v1  ;;  %v451_v8 = vsel %vm449_vm11, %v964_v4, %v965_v3 }
  0xb2   : > { %v618_v9 = vld [vmem:[#allocation2 + $0x48] sm:$0xff]  ;;  %v620_v11 = vld [vmem:[#allocation2 + $0x58] sm:$0xff]  ;;  %394 = vst [vmem:[#allocation2 + $0x60] sm:$0xf] %v388_v6  ;;  %396 = vst [vmem:[#allocation2 + $0x70] sm:$0xf] %v390_v7  ;;  %v978_v12 = vpop.permute.xlu1 %977  ;;  %v973_v13 = vpop.permute.xlu0 %972 }
  0xb3   : > { %457 = vst [vmem:[#allocation2 + $0x80] sm:$0xf0] %v451_v8  ;;  %v639_v15 = vpack.c.bf16 %v618_v9, %v615_v5  ;;  %v641_v16 = vpack.c.bf16 %v620_v11, %v617_v10  ;;  %v980_v17 = vunpack.i.h.bf16 %v978_v12  ;;  %v979_v18 = vunpack.i.l.bf16 %v978_v12 }
  0xb4   : > { %v975_v19 = vunpack.i.h.bf16 %v973_v13  ;;  %v974_v20 = vunpack.i.l.bf16 %v973_v13 }
  0xb5   : > { %674 = vmatpush1.bf16.msra.mxu0 %v639_v15  ;;  %831 = vmatpush3.bf16.msra.mxu1 %v641_v16  ;;  %v450_v21 = vsel %vm449_vm11, %v979_v18, %v964_v4  ;;  %v452_v22 = vsel %vm449_vm11, %v965_v3, %v980_v17  ;;  %v622_v33 = vld [vmem:[#allocation2 + $0x68] sm:$0xff] }
  0xb6   : > { %v427_v23 = vsel %vm424_vm9, %v960_v57, %v975_v19  ;;  %v425_v24 = vsel %vm424_vm9, %v974_v20, %v959_v58  ;;  %832 = vmatprep.subr.bf16.mxu1 %v1054_v14  ;;  %456 = vst [vmem:[#allocation2 + $0x78] sm:$0xf0] %v450_v21  ;;  %458 = vst [vmem:[#allocation2 + $0x88] sm:$0xf0] %v452_v22  ;;  %v988_v25 = vpop.permute.xlu1 %987  ;;  %v983_v26 = vpop.permute.xlu0 %982 }
  0xb7   : > { %433 = vst [vmem:[#allocation2 + $0x88] sm:$0xf] %v427_v23  ;;  %431 = vst [vmem:[#allocation2 + $0x78] sm:$0xf] %v425_v24  ;;  %v990_v27 = vunpack.i.h.bf16 %v988_v25  ;;  %v989_v28 = vunpack.i.l.bf16 %v988_v25  ;;  %v985_v29 = vunpack.i.h.bf16 %v983_v26  ;;  %v984_v30 = vunpack.i.l.bf16 %v983_v26 }
  0xb9   : > { %v500_v31 = vsel %vm287_vm6, %v989_v28, %v990_v27  ;;  %v476_v32 = vsel %vm474_vm12, %v984_v30, %v985_v29  ;;  %v621_v42 = vld [vmem:[#allocation2 + $0x60] sm:$0xff]  ;;  %v623_v46 = vld [vmem:[#allocation2 + $0x70] sm:$0xff] }
  0xba   : > { %v625_v34 = vld [vmem:[#allocation2 + $0x80] sm:$0xff]  ;;  %506 = vst [vmem:[#allocation2 + $0x98] sm:$0xf0] %v500_v31  ;;  %482 = vst [vmem:[#allocation2 + $0x98] sm:$0xf] %v476_v32  ;;  %v998_v35 = vpop.permute.xlu1 %997  ;;  %v993_v36 = vpop.permute.xlu0 %992 }
  0xbb   : > { %v643_v37 = vpack.c.bf16 %v625_v34, %v622_v33  ;;  %v1000_v38 = vunpack.i.h.bf16 %v998_v35  ;;  %v999_v39 = vunpack.i.l.bf16 %v998_v35  ;;  %v995_v40 = vunpack.i.h.bf16 %v993_v36 }
  0xbc   : > { %v994_v41 = vunpack.i.l.bf16 %v993_v36 }
  0xbd   : > { %675 = vmatprep.subr.bf16.mxu0 %v643_v37  ;;  %v550_v43 = vsel %vm548_vm13, %v999_v39, %v1000_v38 }
  0xbe   : > { %v525_v44 = vsel %vm523_vm14, %v994_v41, %v995_v40  ;;  %v624_v45 = vld [vmem:[#allocation2 + $0x78] sm:$0xff]  ;;  %v626_v47 = vld [vmem:[#allocation2 + $0x88] sm:$0xff]  ;;  %556 = vst [vmem:[#allocation2 + $0xb0] sm:$0xf0] %v550_v43  ;;  %v1008_v48 = vpop.permute.xlu1 %1007  ;;  %v1003_v49 = vpop.permute.xlu0 %1002 }
  0xbf   : > { %531 = vst [vmem:[#allocation2 + $0xb0] sm:$0xf] %v525_v44  ;;  %v642_v50 = vpack.c.bf16 %v624_v45, %v621_v42  ;;  %v644_v51 = vpack.c.bf16 %v626_v47, %v623_v46  ;;  %v1010_v52 = vunpack.i.h.bf16 %v1008_v48  ;;  %v1009_v53 = vunpack.i.l.bf16 %v1008_v48  ;;  %v608_v42 = vld [vmem:[%s1195_s1] sm:$0x7] }
  0xc0   : > { %v1005_v54 = vunpack.i.h.bf16 %v1003_v49  ;;  %v1004_v55 = vunpack.i.l.bf16 %v1003_v49 }
  0xc1   : > { %676 = vmatpush1.bf16.msra.mxu0 %v642_v50  ;;  %833 = vmatpush3.bf16.msra.mxu1 %v644_v51  ;;  %v499_v56 = vsel %vm287_vm6, %v1009_v53, %v989_v28  ;;  %v501_v57 = vsel %vm287_vm6, %v990_v27, %v1010_v52  ;;  %v628_v6 = vld [vmem:[#allocation2 + $0x98] sm:$0xff] }
  0xc2   : > { %v475_v58 = vsel %vm474_vm12, %v1004_v55, %v984_v30  ;;  %v477_v59 = vsel %vm474_vm12, %v985_v29, %v1005_v54  ;;  %834 = vmatprep.subr.bf16.mxu1 %v1054_v14  ;;  %505 = vst [vmem:[#allocation2 + $0x90] sm:$0xf0] %v499_v56  ;;  %507 = vst [vmem:[#allocation2 + $0xa0] sm:$0xf0] %v501_v57  ;;  %v1018_v60 = vpop.permute.xlu1 %1017  ;;  %v1013_v61 = vpop.permute.xlu0 %1012 }
  0xc3   : > { %481 = vst [vmem:[#allocation2 + $0x90] sm:$0xf] %v475_v58  ;;  %483 = vst [vmem:[#allocation2 + $0xa0] sm:$0xf] %v477_v59  ;;  %v1020_v62 = vunpack.i.h.bf16 %v1018_v60  ;;  %v1019_v63 = vunpack.i.l.bf16 %v1018_v60  ;;  %v1015_v0 = vunpack.i.h.bf16 %v1013_v61  ;;  %v1014_v1 = vunpack.i.l.bf16 %v1013_v61 }
  0xc5   : > { %v549_v2 = vsel %vm548_vm13, %v1019_v63, %v999_v39  ;;  %v551_v3 = vsel %vm548_vm13, %v1000_v38, %v1020_v62  ;;  %v524_v4 = vsel %vm523_vm14, %v1014_v1, %v994_v41  ;;  %v526_v5 = vsel %vm523_vm14, %v995_v40, %v1015_v0 }
  0xc6   : > { %v631_v7 = vld [vmem:[#allocation2 + $0xb0] sm:$0xff]  ;;  %555 = vst [vmem:[#allocation2 + $0xa8] sm:$0xf0] %v549_v2  ;;  %557 = vst [vmem:[#allocation2 + $0xb8] sm:$0xf0] %v551_v3  ;;  %v1028_v8 = vpop.permute.xlu1 %1027  ;;  %v1023_v9 = vpop.permute.xlu0 %1022 }
  0xc7   : > { %530 = vst [vmem:[#allocation2 + $0xa8] sm:$0xf] %v524_v4  ;;  %532 = vst [vmem:[#allocation2 + $0xb8] sm:$0xf] %v526_v5  ;;  %v646_v10 = vpack.c.bf16 %v631_v7, %v628_v6  ;;  %v1030_v11 = vunpack.i.h.bf16 %v1028_v8  ;;  %v1029_v12 = vunpack.i.l.bf16 %v1028_v8  ;;  %v1025_v13 = vunpack.i.h.bf16 %v1023_v9 }
  0xc8   : > { %v1024_v15 = vunpack.i.l.bf16 %v1023_v9 }
  0xc9   : > { %677 = vmatprep.subr.bf16.mxu0 %v646_v10  ;;  %v576_v16 = vsel %vm573_vm15, %v1029_v12, %v1030_v11  ;;  %v575_v17 = vsel %vm573_vm15, %v1025_v13, %v1029_v12 }
  0xca   : > { %v574_v18 = vsel %vm573_vm15, %v1024_v15, %v1025_v13  ;;  %582 = vst [vmem:[#allocation2 + $0xd0] sm:$0xf] %v576_v16  ;;  %581 = vst [vmem:[#allocation2 + $0xc8] sm:$0xf] %v575_v17  ;;  %v1038_v19 = vpop.permute.xlu1 %1037  ;;  %v1033_v20 = vpop.permute.xlu0 %1032  ;;  %v627_v25 = vld [vmem:[#allocation2 + $0x90] sm:$0xff]  ;;  %v629_v30 = vld [vmem:[#allocation2 + $0xa0] sm:$0xff] }
  0xcb   : > { %580 = vst [vmem:[#allocation2 + $0xc0] sm:$0xf] %v574_v18  ;;  %v1040_v21 = vunpack.i.h.bf16 %v1038_v19  ;;  %v1039_v22 = vunpack.i.l.bf16 %v1038_v19  ;;  %v1035_v23 = vunpack.i.h.bf16 %v1033_v20  ;;  %v1034_v24 = vunpack.i.l.bf16 %v1033_v20 }
  0xcd   : > { %v601_v26 = vsel %vm598_vm0, %v1039_v22, %v1040_v21  ;;  %v600_v27 = vsel %vm598_vm0, %v1035_v23, %v1039_v22  ;;  %v599_v28 = vsel %vm598_vm0, %v1034_v24, %v1035_v23 }
  0xce   : > { %v630_v29 = vld [vmem:[#allocation2 + $0xa8] sm:$0xff]  ;;  %v632_v31 = vld [vmem:[#allocation2 + $0xb8] sm:$0xff]  ;;  %607 = vst [vmem:[#allocation2 + $0xd0] sm:$0xf0] %v601_v26  ;;  %606 = vst [vmem:[#allocation2 + $0xc8] sm:$0xf0] %v600_v27 }
  0xcf   : > { %605 = vst [vmem:[#allocation2 + $0xc0] sm:$0xf0] %v599_v28  ;;  %v645_v32 = vpack.c.bf16 %v630_v29, %v627_v25  ;;  %v647_v33 = vpack.c.bf16 %v632_v31, %v629_v30 }
  0xd1   : > { %678 = vmatpush1.bf16.msra.mxu0 %v645_v32  ;;  %835 = vmatpush3.bf16.msra.mxu1 %v647_v33 }
  0xd2   : > { %836 = vmatprep.subr.bf16.mxu1 %v1054_v14 }
  0xd5   : > { %v634_v34 = vld [vmem:[#allocation2 + $0xc8] sm:$0xff]  ;;  %v635_v36 = vld [vmem:[#allocation2 + $0xd0] sm:$0xff] }
  0xd6   : > { %v633_v35 = vld [vmem:[#allocation2 + $0xc0] sm:$0xff]  ;;  %v649_v37 = vpack.c.bf16 %v634_v34, %v634_v34  ;;  %v650_v39 = vpack.c.bf16 %v635_v36, %v635_v36 }
  0xd7   : > { %v648_v38 = vpack.c.bf16 %v633_v35, %v633_v35 }
  0xd8   : > { %817 = vmatprep.subr.msk.bf16.mxu0 %vm661_vm1, %v649_v37  ;;  %v669_v41 = vsel %vm661_vm1, %v650_v39, 0 }
  0xd9   : > { %v663_v40 = vsel %vm661_vm1, %v648_v38, 0  ;;  %837 = vmatpush3.bf16.msra.mxu1 %v669_v41 }
  0xda   : > { %680 = vmatpush1.bf16.msra.mxu0 %v663_v40 }
  0xdb   : > { %v655_v14 = vpop.permute.xlu0 %654 }
  0xdc   : > { %839 = vmatmul.mubr.msk.bf16.vlgmr.msra.gmra.mrb[0].mxu1 %vm657_vm2, %v608_v42 }
  0xdd   : > { %818 = vmatmul.mubr.msk.bf16.vlgmr.msra.gmra.mrb[0].mxu0 %vm657_vm2, %v608_v42 }
 0x1af   : > { %v746_v44 = vpop.f32.mrb[0].mxu1 }
 0x1b0   : > { %v705_v43 = vpop.f32.mrb[0].mxu0  ;;  %v747_v46 = vadd.f32 %v746_v44, %v655_v14  ;;  %v840_v48 = vpop.f32.mrb[1].mxu1 }
 0x1b1   : > { %v706_v45 = vadd.f32 %v705_v43, %v655_v14  ;;  %v707_v47 = vpop.f32.mrb[1].mxu0  ;;  %v749_v51 = vpop.f32.mrb[2].mxu1 }
 0x1b2   : > { %v708_v49 = vadd.f32 %v707_v47, %v655_v14  ;;  %v709_v50 = vpop.f32.mrb[2].mxu0  ;;  %754 = vst [vmem:[%s170_s16 + $0x10] sm:$0x3f] %v747_v46  ;;  %v841_v53 = vpop.f32.mrb[3].mxu1 }
 0x1b3   : > { %752 = vst [vmem:[%s170_s16] sm:$0x3f] %v706_v45  ;;  %v710_v52 = vpop.f32.mrb[3].mxu0 }
 0x1b4   : > { %753 = vst [vmem:[%s170_s16 + $0x8] sm:$0x3f] %v708_v49 }
 0x1b5 PF: > { %s13_s12 = sadd.s32 1, %s1048_s12  }
 0x1b6   : > { %p10_p4 = scmp.ge.s32.totalorder %s13_s12, 4  }
 0x1b8   :  { %12 = sbr.rel (!%p10_p4) target bundleno = 1 (0x1), region = 62 }

</bundles_post_ra>
